<compile_context>
chip_gen: v6e
topology: v6e:2x2x1
jax: 0.10.0
libtpu: 0.0.40
codegen_flags: <defaults>
</compile_context>

<pallas_src>
import functools

import jax
import jax.numpy as jnp
from jax.experimental import pallas as pl
from jax.experimental.pallas import tpu as pltpu

_LANE = 128


def _round_up(x, m):
    return ((x + m - 1) // m) * m


def _largest_divisor_leq(n, cap):
    cap = max(1, min(n, cap))
    for d in range(cap, 0, -1):
        if n % d == 0:
            return d
    return 1


def _vmem_params():
    """Per-device (budget, vmem_limit) in bytes."""
    cap = 64 * 1024 * 1024
    try:
        info = pltpu.get_tpu_info()
        cap = int(getattr(info, "vmem_capacity_bytes", cap) or cap)
    except Exception:
        pass
    if cap >= 128 * 1024 * 1024:            # v5e / v6e: 128 MiB physical VMEM
        return 96 * 1024 * 1024, 110 * 1024 * 1024
    # v7x-class (64 MiB) or unknown: temp-aware, conservative.
    limit = min(52 * 1024 * 1024, max(16 * 1024 * 1024, (cap * 13) // 16))
    budget = min(36 * 1024 * 1024, (limit * 3) // 4)
    return budget, limit


# ---------------------------------------------------------------------------
# Single-pass fused kernel: one grid step = tb batch elements, full (C, S).
# x is read once, multiplied by the sigmoid gate, written once.
# ---------------------------------------------------------------------------
def _fused_kernel(x_ref, w1t_ref, w2t_ref, o_ref, *, inv_s):
    x_nat = x_ref[...]                                            # (TB, C, S)
    # Max is exact in the native dtype; sum accumulates in f32 without
    # materializing a full-block f32 copy.
    xmax = jnp.max(x_nat, axis=-1).astype(jnp.float32)            # (TB, C)
    xavg = jnp.sum(x_nat, axis=-1, dtype=jnp.float32) * inv_s     # (TB, C)

    w1t = w1t_ref[...].astype(jnp.float32)                        # (C, Ch)
    w2t = w2t_ref[...].astype(jnp.float32)                        # (Ch, C)
    # Shared MLP; layer 2 is linear (no bias), so
    # MLP(max)+MLP(avg) == (relu(max@W1ᵀ) + relu(avg@W1ᵀ)) @ W2ᵀ.
    h = (jnp.maximum(jnp.dot(xmax, w1t, preferred_element_type=jnp.float32), 0.0)
         + jnp.maximum(jnp.dot(xavg, w1t, preferred_element_type=jnp.float32), 0.0))
    gate = jax.nn.sigmoid(jnp.dot(h, w2t, preferred_element_type=jnp.float32))

    o_ref[...] = (x_nat * gate.astype(x_nat.dtype)[:, :, None]).astype(o_ref.dtype)


# ---------------------------------------------------------------------------
# Two-pass S-tiled path (very large C*S volumes).
# Pass A: running max/sum over S-chunks in VMEM scratch; gate at last chunk.
# ---------------------------------------------------------------------------
def _gate_kernel(x_ref, w1t_ref, w2t_ref, gate_ref, max_sc, sum_sc, *,
                 s_true, ts, padded):
    sj = pl.program_id(1)
    last = pl.num_programs(1) - 1

    @pl.when(sj == 0)
    def _():
        max_sc[...] = jnp.full_like(max_sc, -jnp.inf)
        sum_sc[...] = jnp.zeros_like(sum_sc)

    x_blk = x_ref[...]                                            # (TB, C, TS)
    # Padding lanes (if any) are zeros -> the sum never needs a mask.
    sum_sc[...] = sum_sc[...] + jnp.sum(x_blk, axis=-1, dtype=jnp.float32)

    if padded:
        # Only the last chunk can contain padding: plain max elsewhere.
        @pl.when(sj != last)
        def _():
            max_sc[...] = jnp.maximum(
                max_sc[...], jnp.max(x_blk, axis=-1).astype(jnp.float32))

        @pl.when(sj == last)
        def _():
            lane = jax.lax.broadcasted_iota(jnp.int32, x_blk.shape, 2) + sj * ts
            masked = jnp.where(lane < s_true, x_blk.astype(jnp.float32), -jnp.inf)
            max_sc[...] = jnp.maximum(max_sc[...], jnp.max(masked, axis=-1))
    else:
        max_sc[...] = jnp.maximum(
            max_sc[...], jnp.max(x_blk, axis=-1).astype(jnp.float32))

    @pl.when(sj == last)
    def _():
        xmax = max_sc[...]
        xavg = sum_sc[...] * (1.0 / s_true)
        w1t = w1t_ref[...].astype(jnp.float32)
        w2t = w2t_ref[...].astype(jnp.float32)
        h = (jnp.maximum(jnp.dot(xmax, w1t, preferred_element_type=jnp.float32), 0.0)
             + jnp.maximum(jnp.dot(xavg, w1t, preferred_element_type=jnp.float32), 0.0))
        gate = jax.nn.sigmoid(jnp.dot(h, w2t, preferred_element_type=jnp.float32))
        gate_ref[...] = gate[:, :, None].astype(gate_ref.dtype)    # (TB, C, 1)


# Pass B: broadcast multiply over S-chunks (runs in the input dtype).
def _mul_kernel(x_ref, gate_ref, o_ref):
    x_nat = x_ref[...]                                            # (TB, C, TS)
    gate = gate_ref[...].astype(x_nat.dtype)                      # (TB, C, 1)
    o_ref[...] = (x_nat * gate).astype(o_ref.dtype)


# ---------------------------------------------------------------------------
# Wrapper
# ---------------------------------------------------------------------------
def channel_attention(x, w1, w2, *, vmem_budget_bytes=None):
    """x: (B, C, D, H, W); w1: (C//r, C); w2: (C, C//r) (PyTorch Linear layout)."""
    B, C, D, H, W = x.shape
    S = D * H * W
    itemsize = jnp.dtype(x.dtype).itemsize

    budget, vmem_limit = _vmem_params()
    if vmem_budget_bytes is not None:
        budget = vmem_budget_bytes

    # Pre-transpose weights so in-kernel matmuls keep channel/hidden on lanes.
    w1t = jnp.asarray(w1).T                                       # (C, C//r)
    w2t = jnp.asarray(w2).T                                       # (C//r, C)

    x_flat = x.reshape(B, C, S)                                   # free reshape
    per_batch_bytes = C * S * itemsize
    # In-kernel temporaries: ~6x block bytes for f32, ~8x for sub-32-bit input.
    mult = 6 if itemsize >= 4 else 8

    if mult * per_batch_bytes <= budget:
        # ---------------- fused single-pass path (1 read + 1 write of x) ----
        max_tb = budget // (mult * per_batch_bytes)
        cap = B if B < 2 else max(1, B // 2)       # keep >=2 grid blocks (v7x)
        tb = _largest_divisor_leq(B, min(max_tb, cap))

        out_flat = pl.pallas_call(
            functools.partial(_fused_kernel, inv_s=1.0 / S),
            out_shape=jax.ShapeDtypeStruct((B, C, S), x.dtype),
            grid_spec=pltpu.PrefetchScalarGridSpec(
                num_scalar_prefetch=0,
                grid=(B // tb,),
                in_specs=[
                    pl.BlockSpec((tb, C, S), lambda b: (b, 0, 0)),
                    pl.BlockSpec(w1t.shape, lambda b: (0, 0)),
                    pl.BlockSpec(w2t.shape, lambda b: (0, 0)),
                ],
                out_specs=pl.BlockSpec((tb, C, S), lambda b: (b, 0, 0)),
            ),
            compiler_params=pltpu.CompilerParams(
                dimension_semantics=("parallel",),
                vmem_limit_bytes=vmem_limit),
        )(x_flat, w1t, w2t)
        return out_flat.reshape(B, C, D, H, W)

    # ---------------------- two-pass S-tiled path ---------------------------
    tb = 1

    # Pass B tile: input + output blocks, double buffered (~4x).
    ts_b = max(_LANE, (budget // (4 * tb * C * itemsize)) // _LANE * _LANE)
    ts_b = min(ts_b, _round_up(S, _LANE))
    if S % _LANE == 0:
        q = S // _LANE
        for cand in range(min(q, ts_b // _LANE), 0, -1):
            if q % cand == 0:
                ts_b = cand * _LANE               # divides S -> no padding
                break

    # Pass A tile: input only (accumulators are tiny) -> larger tile; keep it a
    # multiple of ts_b so a single padding (if any) covers both passes.
    ts_a = max(ts_b, (budget // (3 * tb * C * itemsize)) // ts_b * ts_b)
    ts_a = min(ts_a, _round_up(S, ts_b))
    if S % ts_b == 0:
        q = S // ts_b
        for cand in range(min(q, ts_a // ts_b), 0, -1):
            if q % cand == 0:
                ts_a = cand * ts_b
                break

    sp = _round_up(S, ts_a)
    padded = sp != S
    if padded:
        # TODO(synk): could use CompilerParams(allow_input_fusion) to fuse this
        # zero-pad into the pallas operand instead of a standalone pad pass.
        x_flat = jnp.pad(x_flat, ((0, 0), (0, 0), (0, sp - S)))

    n_sa = sp // ts_a
    n_sb = sp // ts_b

    gate = pl.pallas_call(
        functools.partial(_gate_kernel, s_true=S, ts=ts_a, padded=padded),
        out_shape=jax.ShapeDtypeStruct((B, C, 1), jnp.float32),
        grid_spec=pltpu.PrefetchScalarGridSpec(
            num_scalar_prefetch=0,
            grid=(B // tb, n_sa),
            in_specs=[
                pl.BlockSpec((tb, C, ts_a), lambda b, s: (b, 0, s)),
                pl.BlockSpec(w1t.shape, lambda b, s: (0, 0)),
                pl.BlockSpec(w2t.shape, lambda b, s: (0, 0)),
            ],
            out_specs=pl.BlockSpec((tb, C, 1), lambda b, s: (b, 0, 0)),
            scratch_shapes=[pltpu.VMEM((tb, C), jnp.float32),
                            pltpu.VMEM((tb, C), jnp.float32)],
        ),
        compiler_params=pltpu.CompilerParams(
            dimension_semantics=("parallel", "arbitrary"),
            vmem_limit_bytes=vmem_limit),
    )(x_flat, w1t, w2t)

    out_flat = pl.pallas_call(
        _mul_kernel,
        out_shape=jax.ShapeDtypeStruct((B, C, sp), x.dtype),
        grid_spec=pltpu.PrefetchScalarGridSpec(
            num_scalar_prefetch=0,
            grid=(B // tb, n_sb),
            in_specs=[
                pl.BlockSpec((tb, C, ts_b), lambda b, s: (b, 0, s)),
                pl.BlockSpec((tb, C, 1), lambda b, s: (b, 0, 0)),
            ],
            out_specs=pl.BlockSpec((tb, C, ts_b), lambda b, s: (b, 0, s)),
        ),
        compiler_params=pltpu.CompilerParams(
            dimension_semantics=("parallel", "parallel"),
            vmem_limit_bytes=vmem_limit),
    )(x_flat, gate)

    if padded:
        out_flat = out_flat[:, :, :S]
    return out_flat.reshape(B, C, D, H, W)


# ---------------------------------------------------------------------------
# Pure-JAX reference (matches the PyTorch forward).
# ---------------------------------------------------------------------------
def channel_attention_ref(x, w1, w2):
    B, C = x.shape[:2]
    xf = x.reshape(B, C, -1)
    max_p = jnp.max(xf, axis=-1)
    avg_p = jnp.mean(xf, axis=-1)

    def mlp(p):
        return jnp.maximum(p @ w1.T, 0.0) @ w2.T

    gate = jax.nn.sigmoid(mlp(max_p) + mlp(avg_p))
    return gate[:, :, None, None, None] * x


if __name__ == "__main__":
    key = jax.random.PRNGKey(0)

    def check(B, C, D, H, W, ratio, budget=None):
        hidden = max(1, C // ratio)
        kx, k1, k2 = jax.random.split(
            jax.random.fold_in(key, B * C * D * H * W), 3)
        x = jax.random.normal(kx, (B, C, D, H, W), dtype=jnp.float32)
        w1 = jax.random.normal(k1, (hidden, C), dtype=jnp.float32) * 0.1
        w2 = jax.random.normal(k2, (C, hidden), dtype=jnp.float32) * 0.1

        out = jax.block_until_ready(
            channel_attention(x, w1, w2, vmem_budget_bytes=budget))
        ref = channel_attention_ref(x, w1, w2)
        assert out.shape == x.shape
        assert jnp.allclose(out, ref, atol=1e-5, rtol=1e-5), "mismatch vs reference"

    # 1) Small volume -> fused single-pass path (no pad, grid of 2).
    check(B=2, C=32, D=4, H=8, W=8, ratio=16)
    # 2) Tiny budget -> two-pass S-tiled path, tiles divide S (no padding).
    check(B=2, C=32, D=4, H=8, W=8, ratio=16, budget=64 * 1024)
    # 3) Spatial size not a multiple of 128 -> fused path, full-extent block.
    check(B=2, C=16, D=3, H=5, W=7, ratio=4)
    # 4) Tiny budget + non-128 spatial -> two-pass path with padded last chunk.
    check(B=2, C=16, D=3, H=5, W=7, ratio=4, budget=16 * 1024)

    print("KERNEL_OK")
</pallas_src>

<mosaic_0001>
module attributes {stable_mosaic.version = 11 : i64} {
  func.func @_fused_kernel(%arg0: i32, %arg1: memref<1x32x256xf32, #tpu.memory_space<vmem>>, %arg2: memref<32x2xf32, #tpu.memory_space<vmem>>, %arg3: memref<2x32xf32, #tpu.memory_space<vmem>>, %arg4: memref<1x32x256xf32, #tpu.memory_space<vmem>>) attributes {dimension_semantics = [#tpu.dimension_semantics<parallel>], iteration_bounds = array<i64: 2>, scalar_prefetch = 0 : i64, scratch_operands = 0 : i64, tpu.core_type = #tpu.core_type<tc>, window_params = [{transform_indices = @transform_0, window_bounds = array<i64: 1, 32, 256>}, {pipeline_mode = #tpu.pipeline_mode<synchronous>, transform_indices = @transform_1, window_bounds = array<i64: 32, 2>}, {pipeline_mode = #tpu.pipeline_mode<synchronous>, transform_indices = @transform_2, window_bounds = array<i64: 2, 32>}, {transform_indices = @transform_3, window_bounds = array<i64: 1, 32, 256>}]} {
    %c0 = arith.constant 0 : index
    %c0_0 = arith.constant 0 : index
    %c0_1 = arith.constant 0 : index
    %0 = vector.load %arg1[%c0, %c0_0, %c0_1] : memref<1x32x256xf32, #tpu.memory_space<vmem>>, vector<1x32x256xf32>
    %cst = arith.constant dense<0xFF800000> : vector<1x32xf32>
    %1 = vector.multi_reduction <maximumf>, %0, %cst [2] : vector<1x32x256xf32> to vector<1x32xf32>
    %cst_2 = arith.constant dense<0.000000e+00> : vector<1x32xf32>
    %2 = vector.multi_reduction <add>, %0, %cst_2 [2] : vector<1x32x256xf32> to vector<1x32xf32>
    %cst_3 = arith.constant 3.906250e-03 : f32
    %3 = vector.broadcast %cst_3 : f32 to vector<1x32xf32>
    %4 = arith.mulf %2, %3 : vector<1x32xf32>
    %c0_4 = arith.constant 0 : index
    %c0_5 = arith.constant 0 : index
    %5 = vector.load %arg2[%c0_4, %c0_5] : memref<32x2xf32, #tpu.memory_space<vmem>>, vector<32x2xf32>
    %c0_6 = arith.constant 0 : index
    %c0_7 = arith.constant 0 : index
    %6 = vector.load %arg3[%c0_6, %c0_7] : memref<2x32xf32, #tpu.memory_space<vmem>>, vector<2x32xf32>
    %cst_8 = arith.constant dense<0.000000e+00> : vector<1x2xf32>
    %7 = tpu.matmul %1, %5, %cst_8 {dimension_numbers = #tpu.dot_dimension_numbers<[1], [0], [0], [1], [0, 0, 1, 1], [], []>} : vector<1x32xf32>, vector<32x2xf32>, vector<1x2xf32> -> vector<1x2xf32>
    %cst_9 = arith.constant 0.000000e+00 : f32
    %8 = vector.broadcast %cst_9 : f32 to vector<1x2xf32>
    %9 = arith.maximumf %7, %8 : vector<1x2xf32>
    %cst_10 = arith.constant dense<0.000000e+00> : vector<1x2xf32>
    %10 = tpu.matmul %4, %5, %cst_10 {dimension_numbers = #tpu.dot_dimension_numbers<[1], [0], [0], [1], [0, 0, 1, 1], [], []>} : vector<1x32xf32>, vector<32x2xf32>, vector<1x2xf32> -> vector<1x2xf32>
    %cst_11 = arith.constant 0.000000e+00 : f32
    %11 = vector.broadcast %cst_11 : f32 to vector<1x2xf32>
    %12 = arith.maximumf %10, %11 : vector<1x2xf32>
    %13 = arith.addf %9, %12 : vector<1x2xf32>
    %cst_12 = arith.constant dense<0.000000e+00> : vector<1x32xf32>
    %14 = tpu.matmul %13, %6, %cst_12 {dimension_numbers = #tpu.dot_dimension_numbers<[1], [0], [0], [1], [0, 0, 1, 1], [], []>} : vector<1x2xf32>, vector<2x32xf32>, vector<1x32xf32> -> vector<1x32xf32>
    %15 = arith.negf %14 : vector<1x32xf32>
    %16 = math.exp %15 : vector<1x32xf32>
    %cst_13 = arith.constant 1.000000e+00 : f32
    %17 = vector.broadcast %cst_13 : f32 to vector<1x32xf32>
    %18 = arith.addf %17, %16 : vector<1x32xf32>
    %19 = arith.divf %17, %18 : vector<1x32xf32>
    %20 = vector.shape_cast %19 : vector<1x32xf32> to vector<1x32x1xf32>
    %21 = vector.broadcast %20 : vector<1x32x1xf32> to vector<1x32x256xf32>
    %22 = arith.mulf %0, %21 : vector<1x32x256xf32>
    %c0_14 = arith.constant 0 : index
    %c0_15 = arith.constant 0 : index
    %c0_16 = arith.constant 0 : index
    %23 = vector.load %arg4[%c0_14, %c0_15, %c0_16] : memref<1x32x256xf32, #tpu.memory_space<vmem>>, vector<1x32x256xf32>
    tpu.vector_store %arg4[%c0_14, %c0_15, %c0_16], %22 {strides = array<i32>} : memref<1x32x256xf32, #tpu.memory_space<vmem>>, vector<1x32x256xf32>,
    return
  }
  func.func @transform_0(%arg0: i32) -> (i32, i32, i32) {
    %c0_i32 = arith.constant 0 : i32
    %c0_i32_0 = arith.constant 0 : i32
    %c0_i32_1 = arith.constant 0 : i32
    return %arg0, %c0_i32, %c0_i32_0 : i32, i32, i32
  }
  func.func @transform_1(%arg0: i32) -> (i32, i32) {
    %c0_i32 = arith.constant 0 : i32
    %c0_i32_0 = arith.constant 0 : i32
    %c0_i32_1 = arith.constant 0 : i32
    return %c0_i32, %c0_i32_0 : i32, i32
  }
  func.func @transform_2(%arg0: i32) -> (i32, i32) {
    %c0_i32 = arith.constant 0 : i32
    %c0_i32_0 = arith.constant 0 : i32
    %c0_i32_1 = arith.constant 0 : i32
    return %c0_i32, %c0_i32_0 : i32, i32
  }
  func.func @transform_3(%arg0: i32) -> (i32, i32, i32) {
    %c0_i32 = arith.constant 0 : i32
    %c0_i32_0 = arith.constant 0 : i32
    %c0_i32_1 = arith.constant 0 : i32
    return %arg0, %c0_i32, %c0_i32_0 : i32, i32, i32
  }
}

</mosaic_0001>

<bundles_post_ra>
// kernel: tpu_custom_call.1
= control target key start
LH: loop header
LB: loop body
LE: loop exit
PB: predicated region body
PF: predicated region fallthrough
CT: control target
= control target key end

     0   :  { %8 = vsyncpa [#allocation3], 0  ;;  %s1115_s0 = inlined_call_operand.hbm [shape: f32[2,32,256], index: 0, kind: input, shape index: {}]   ;;  %s1116_s1 = inlined_call_operand.vmem [shape: f32[32,2], index: 1, kind: input, shape index: {}]   ;;  %s1117_s2 = inlined_call_operand.vmem [shape: f32[2,32], index: 2, kind: input, shape index: {}]   ;;  %s1118_s3 = inlined_call_operand.hbm [shape: f32[2,32,256], index: 3, kind: output, shape index: {}]  }
   0x1   :  { %10 = vsyncpa [#allocation3 + $0x1], 0 }
   0x2   :  { %11 = vsyncpa [#allocation4], 0 }
   0x3   :  { %13 = vsyncpa [#allocation4 + $0x1], 0  ;;  %s876_s12 = smov 0   ;;  %s878_s13 = smov 0  }
   0x4   :  { %s880_s14 = smov 0   ;;  %s882_s15 = smov 0  }
   0x5 LB: > { %s897_s16 = sadd.s32 4294967295, %s846_s15   ;;  %s638_s17 = sadd.s32 4294967294, %s846_s15   ;;  %s846_s15 = sphi %s882_s15, %s1133_s15   ;;  %s842_s14 = sphi %s880_s14, %s1132_s14   ;;  %s838_s13 = sphi %s878_s13, %s1131_s13   ;;  %s834_s12 = sphi %s876_s12, %s1130_s12  }
   0x6   : > { %s901_s18 = sadd.s32 1, %s846_s15   ;;  %s26_s19 = sadd.s32 1, %s842_s14 }
   0x7   : > { %s23_s20 = ssub.s32 %s846_s15, %s901_s18  ;;  %p33_p0 = scmp.ne.s32.totalorder %s842_s14, %s838_s13 }
   0x8   : > { %p24_p1 = scmp.eq.s32.totalorder %s23_s20, 0  ;;  %p34_p2 = scmp.eq.s32.totalorder %s846_s15, 0 }
   0x9   : > { %p39_p3 = scmp.ne.s32.totalorder %s838_s13, %s834_s12  ;;  %p40_p4 = scmp.eq.s32.totalorder %s897_s16, 0 }
   0xa   : > { %s913_s21 = scalar_select %p24_p1, %s842_s14, %s26_s19  }
   0xb   : > { %p915_p5 = por %p34_p2, %p33_p0  ;;  %p919_p6 = por %p40_p4, %p39_p3 }
   0xc   : > { %p105_p7 = scmp.eq.s32.totalorder %s897_s16, 1  ;;  %p111_p8 = scmp.eq.s32.totalorder %s638_s17, 1 }
   0xd   : > { %s1122_s23 = scalar_select %p919_p6, 1, 0 }
   0xe   : > { %p710_p10 = scmp.lt.s32.totalorder %s846_s15, 2  ;;  %p926_p11 = por %p105_p7, %p33_p0 }
   0xf   : > { %p930_p12 = por %p111_p8, %p39_p3  ;;  %s137_s26 = sand.u32 1, %s842_s14  }
  0x10   : > { %s1123_s24 = scalar_select %p926_p11, 1, 0 }
  0x11   : > { %s1124_s25 = scalar_select %p930_p12, 1, 0 }
  0x12   : > { %s657_s27 = sshll.u32 %s846_s15, 10  ;;  %s641_s28 = sshll.u32 %s137_s26, 6 }
  0x13   : > { %s939_s4 = scalar_lea.hbm %s1115_s0, %s657_s27  ;;  %s141_s5 = scalar_lea.vmem [#allocation2], %s641_s28 }
  0x14   : > { %s148_s6 = sshll.u32 %s141_s5, 4  ;;  %p943_p13 = pnand %p710_p10, %p915_p5  ;;  %s947_s6 = int_to_ptr.vmem [resolvable:$true] %s148_s6 }
  0x15   : > { %s949_s8 = scalar_lea.sflag [#allocation3], %s137_s26  ;;  %s754_s9 = scalar_lea.hbm %s939_s4, 1024 }
  0x16   : > { %p755_p0 = scmp.ne.s32.totalorder %s939_s4, %s754_s9  ;;  %p756_p1 = pneg %p943_p13 }
  0x17   : > { %s759_s17 = scalar_lea.hbm %s1115_s0, 2048  ;;  %p760_p4 = scmp.lt.s32.totalorder %s939_s4, %s1115_s0 }
  0x18   : > { %p757_p2 = pnand %p756_p1, %p755_p0  ;;  %p761_p5 = scmp.lt.s32.totalorder %s759_s17, %s754_s9 }
  0x1a   : > { %p758_p3 = pneg %p757_p2  ;;  %p762_p7 = por %p761_p5, %p760_p4 }
  0x1c   : > { %p763_p8 = pnand %p762_p7, %p758_p3 }
  0x1e   : > { %766 = shalt.err (!%p763_p8)
}
  0x1f   : > { %s767_s22 = scalar_lea.vmem %s947_s6, 1024  ;;  %s848_s26 = smov [#allocation2]  }
  0x20   : > { %p768_p10 = scmp.ne.s32.totalorder %s947_s6, %s767_s22  ;;  %s772_s27 = sshll.u32 %s848_s26, 4  ;;  %s773_s27 = int_to_ptr.vmem [resolvable:$false] %s772_s27 }
  0x21   : > { %s774_s28 = scalar_lea.vmem %s773_s27, 2048  ;;  %p775_p2 = scmp.lt.s32.totalorder %s947_s6, %s773_s27 }
  0x22   : > { %p770_p9 = pnand %p768_p10, %p756_p1  ;;  %p776_p12 = scmp.lt.s32.totalorder %s774_s28, %s767_s22 }
  0x24   : > { %p771_p0 = pneg %p770_p9  ;;  %p777_p11 = por %p776_p12, %p775_p2 }
  0x26   : > { %p778_p6 = pnand %p777_p11, %p771_p0 }
  0x28   : > { %781 = shalt.err (!%p778_p6)
}
  0x29   : > { %s849_s29 = smov 256   ;;  %s850_s30 = smov 16  }
  0x2a   : > { %705 = dma.hbm_to_vmem [thread:$0]  (!%p943_p13), %s939_s4, 1024, %s947_s6, %s949_s8, %s849_s29, %s849_s29, %s850_s30  }
  0x2b   : > { %p644_p9 = scmp.ge.s32.totalorder %s846_s15, 1  ;;  %p156_p1 = scmp.lt.s32.totalorder %s846_s15, 3 }
  0x2d   : > { %p157_p3 = pnand %p644_p9, %p156_p1 }
  0x2e   : > { %s973_s5 = sand.u32 (!%p157_p3), 1, %s838_s13   ;;  %p1126_p6 = scmp.ne.s32.totalorder (!%p157_p3), %s1122_s23, 0 }
  0x2f   : > { %160 = sbr.rel (%p157_p3) target bundleno = 774 (0x306), region = 32  ;;  %s645_s9 = sshll.u32 (!%p157_p3), %s973_s5, 6 }
  0x30   : > { %s163_s10 = scalar_lea.sflag (!%p157_p3), [#allocation3], %s973_s5  ;;  %s166_s11 = scalar_lea.vmem (!%p157_p3), [#allocation2], %s645_s9 }
  0x34   : > { %825 = dma.done.wait (%p1126_p6), %s163_s10, 1024  }
  0x35   : > { %827 = vsyncadd (%p1126_p6), %s163_s10, 4294966272  ;;  %v983_v0 = vld [vmem:[%s166_s11 + $0x20] sm:$0xff]  ;;  %v985_v1 = vld [vmem:[%s166_s11 + $0x28] sm:$0xff]  ;;  %v851_v16 = vmov 0.0   ;;  %vm852_vm0 = vmmov 0   ;;  %v234_v21 = vlaneseq  ;;  %vm245_vm1 = vcmask 130112  }
  0x36   : > { %v987_v2 = vld [vmem:[%s166_s11] sm:$0xff]  ;;  %v215_v3 = vadd.f32 %v985_v1, %v983_v0  ;;  %v991_v4 = vld [vmem:[%s166_s11 + $0x8] sm:$0xff]  ;;  %v993_v5 = vld [vmem:[%s166_s11 + $0x10] sm:$0xff]  ;;  %v203_v15 = vmax.f32 %v983_v0, %v985_v1  ;;  %682 = vmatprep.subr.mxu1 %v851_v16  ;;  %671 = vmatprep.subr.mxu0 %v851_v16  ;;  %vm252_vm2 = vcmask 195712   ;;  %vm259_vm3 = vcmask 261312   ;;  %s188_s27 = scalar_lea.vmem [#allocation5], %s645_s9 }
  0x37   : > { %v995_v6 = vld [vmem:[%s166_s11 + $0x18] sm:$0xff]  ;;  %v209_v7 = vadd.f32 %v991_v4, %v987_v2  ;;  %v197_v8 = vmax.f32 %v987_v2, %v991_v4  ;;  %v1003_v10 = vld [vmem:[%s166_s11 + $0x30] sm:$0xff]  ;;  %v226_v19 = vld [vmem:[%s1116_s1 + $0x8] sm:$0xff]  ;;  %690 = vmatprep.mubr.msk.f32.mxu1 %vm852_vm0, %v851_v16  ;;  %679 = vmatprep.mubr.msk.f32.mxu0 %vm852_vm0, %v851_v16  ;;  %v235_v22 = vand.u32 127, %v234_v21  ;;  %v1040_v23 = vshrl.u32 %v234_v21, 7  ;;  %s565_s28 = sshll.u32 %s188_s27, 4  ;;  %s1065_s28 = int_to_ptr.vmem [resolvable:$true] %s565_s28 }
  0x38   : > { %216 = vadd.xlane.f32.xlu1 %v215_v3  ;;  %v212_v9 = vadd.f32 %v995_v6, %v993_v5  ;;  %v1005_v11 = vld [vmem:[%s166_s11 + $0x38] sm:$0xff]  ;;  %v200_v13 = vmax.f32 %v993_v5, %v995_v6  ;;  %v227_v18 = vld [vmem:[%s1116_s1 + $0x10] sm:$0xff]  ;;  %v225_v20 = vld [vmem:[%s1116_s1] sm:$0xff]  ;;  %vm261_vm4 = vcmask 261120   ;;  %vm436_vm5 = vcmask 1041408   ;;  %s658_s29 = sshll.u32 %s897_s16, 10 }
  0x39   : > { %210 = vadd.xlane.f32.xlu0 %v209_v7  ;;  %v218_v12 = vadd.f32 %v1005_v11, %v1003_v10  ;;  %v206_v14 = vmax.f32 %v1003_v10, %v1005_v11  ;;  %v228_v17 = vld [vmem:[%s1116_s1 + $0x18] sm:$0xff]  ;;  %v240_v25 = vadd.s32 4294967288, %v235_v22  ;;  %v247_v27 = vadd.s32 4294967280, %v235_v22  ;;  %v229_v57 = vld [vmem:[%s1117_s2] sm:$0x3]  ;;  %s1070_s10 = scalar_lea.hbm %s1118_s3, %s658_s29  ;;  %s552_s16 = scalar_lea.sflag [#allocation4], %s973_s5 }
  0x3a   : > { %683 = vmatpush3.msra.mxu1 %v228_v17  ;;  %672 = vmatpush3.msra.mxu0 %v228_v17  ;;  %v254_v28 = vadd.s32 4294967272, %v235_v22  ;;  %v238_v29 = vsub.s32 %v235_v22, %v1040_v23  ;;  %vm432_vm6 = vcmask 15360   ;;  %s782_s11 = scalar_lea.vmem %s1065_s28, 1024  ;;  %p1127_p12 = scmp.ne.s32.totalorder %s1123_s24, 0 }
  0x3b   : > { %684 = vmatprep.subr.mxu1 %v851_v16  ;;  %673 = vmatprep.subr.mxu0 %v851_v16  ;;  %v243_v31 = vsub.s32 %v240_v25, %v1040_v23  ;;  %v250_v34 = vsub.s32 %v247_v27, %v1040_v23  ;;  %p783_p11 = scmp.ne.s32.totalorder %s1065_s28, %s782_s11  ;;  %s853_s23 = smov [#allocation5]  }
  0x3c   : > { %198 = vmax.xlane.f32.xlu1 %v197_v8  ;;  %685 = vmatpush3.msra.mxu1 %v227_v18  ;;  %v257_v37 = vsub.s32 %v254_v28, %v1040_v23  ;;  %s786_s4 = sshll.u32 %s853_s23, 4  ;;  %s787_s4 = int_to_ptr.vmem [resolvable:$false] %s786_s4 }
  0x3d   : > { %213 = vadd.xlane.f32.xlu0 %v212_v9  ;;  %674 = vmatpush3.msra.mxu0 %v227_v18  ;;  %p784_p13 = pnand %p783_p11, %p1127_p12  ;;  %s788_s6 = scalar_lea.vmem %s787_s4, 2048 }
  0x3e   : > { %686 = vmatprep.subr.mxu1 %v851_v16  ;;  %675 = vmatprep.subr.mxu0 %v851_v16  ;;  %p789_p5 = scmp.lt.s32.totalorder %s1065_s28, %s787_s4  ;;  %p790_p7 = scmp.lt.s32.totalorder %s788_s6, %s782_s11 }
  0x3f   : > { %687 = vmatpush3.msra.mxu1 %v226_v19  ;;  %676 = vmatpush3.msra.mxu0 %v226_v19  ;;  %p785_p4 = pneg %p784_p13 }
  0x40   : > { %219 = vadd.xlane.f32.xlu1 %v218_v12  ;;  %688 = vmatprep.subr.mxu1 %v851_v16  ;;  %p791_p8 = por %p790_p7, %p789_p5 }
  0x41   : > { %201 = vmax.xlane.f32.xlu0 %v200_v13  ;;  %677 = vmatprep.subr.mxu0 %v851_v16 }
  0x42   : > { %689 = vmatpush3.msra.mxu1 %v225_v20  ;;  %678 = vmatpush3.msra.mxu0 %v225_v20  ;;  %p792_p10 = pnand %p791_p8, %p785_p4 }
  0x43   : > { %693 = vmatprep.subr.mxu0 %v851_v16 }
  0x44   : > { %207 = vmax.xlane.f32.xlu1 %v206_v14  ;;  %v518_v14 = vsub.s32 0, %v1040_v23 }
  0x45   : > { %204 = vmax.xlane.f32.xlu0 %v203_v15 }
  0xc1   : > { %v217_v24 = vpop.xlane.xlu1 %216 }
  0xc2   : > { %v211_v26 = vpop.xlane.xlu0 %210  ;;  %v223_v35 = vmul.f32 0.00390625, %v217_v24 }
  0xc3   : > { %v221_v30 = vmul.f32 0.00390625, %v211_v26 }
  0xc4   : > { %v351_v43 = vrot.slane %v223_v35, %v250_v34 }
  0xc5   : > { %v199_v32 = vpop.xlane.xlu1 %198  ;;  %v342_v38 = vrot.slane %v221_v30, %v238_v29 }
  0xc6   : > { %v214_v33 = vpop.xlane.xlu0 %213  ;;  %v239_v49 = vrot.slane %v199_v32, %v238_v29 }
  0xc7   : > { %v222_v36 = vmul.f32 0.00390625, %v214_v33 }
  0xc9   : > { %v346_v39 = vrot.slane %v222_v36, %v243_v31  ;;  %v220_v40 = vpop.xlane.xlu1 %219 }
  0xca   : > { %v202_v41 = vpop.xlane.xlu0 %201  ;;  %v224_v42 = vmul.f32 0.00390625, %v220_v40 }
  0xcb   : > { %v347_v44 = vsel %vm245_vm1, %v346_v39, %v342_v38  ;;  %v244_v45 = vrot.slane %v202_v41, %v243_v31 }
  0xcc   : > { %v356_v46 = vrot.slane %v224_v42, %v257_v37  ;;  %v352_v48 = vsel %vm252_vm2, %v351_v43, %v347_v44 }
  0xcd   : > { %v208_v47 = vpop.xlane.xlu1 %207  ;;  %v246_v54 = vsel %vm245_vm1, %v244_v45, %v239_v49 }
  0xce   : > { %v205_v50 = vpop.xlane.xlu0 %204  ;;  %v258_v51 = vrot.slane %v208_v47, %v257_v37  ;;  %v357_v52 = vsel %vm259_vm3, %v356_v46, %v352_v48 }
  0xcf   : > { %v251_v53 = vrot.slane %v205_v50, %v250_v34  ;;  %691 = vmatmul.mubr.msk.f32.vlgmr.msra.gmra.mxu1 %vm261_vm4, %v357_v52 }
  0xd1   : > { %v253_v55 = vsel %vm252_vm2, %v251_v53, %v246_v54 }
  0xd2   : > { %v260_v56 = vsel %vm259_vm3, %v258_v51, %v253_v55 }
  0xd3   : > { %680 = vmatmul.mubr.msk.f32.vlgmr.msra.gmra.mxu0 %vm261_vm4, %v260_v56 }
  0xd4   : > { %695 = vmatprep.mubr.msk.f32.mxu0 %vm852_vm0, %v851_v16  ;;  %694 = vmatpush3.msk.msra.mxu0 %vm436_vm5, %v229_v57 }
 0x18f   : > { %v426_v58 = vpop.f32.mrf.mxu1 }
 0x190   : > { %v430_v61 = vmax.f32 %v426_v58, 0.0 }
 0x191   : > { %v692_v59 = vpop.f32.mrf.mxu1 }
 0x193   : > { %v330_v60 = vpop.f32.mrf.mxu0 }
 0x194   : > { %v334_v62 = vmax.f32 %v330_v60, 0.0 }
 0x195   : > { %v681_v63 = vpop.f32.mrf.mxu0 }
 0x196   : > { %v431_v3 = vadd.f32 %v430_v61, %v334_v62 }
 0x198   : > { %696 = vmatmul.mubr.msk.f32.vlgmr.msra.gmra.mxu0 %vm432_vm6, %v431_v3 }
 0x258   : > { %v506_v7 = vpop.f32.mrf.mxu0 }
 0x259   : > { %v651_v8 = vmul.f32 -1.442695, %v506_v7 }
 0x25a   : > { %v697_v9 = vpop.f32.mrf.mxu0 }
 0x25b   : > { %750 = vpow2.f32 %v651_v8 }
 0x268   : > { %v751_v12 = vpop.eup %750 }
 0x269   : > { %v513_v13 = vadd.f32 1.0, %v751_v12 }
 0x26b   : > { %752 = vrcp.f32 %v513_v13 }
 0x278   : > { %v753_v15 = vpop.eup %752 }
 0x279   : > { %v519_v16 = vrot.slane %v753_v15, %v518_v14 }
 0x27b   : > { %525 = vbcast.lane.b32.xlu1 %v519_v16, 264  ;;  %521 = vbcast.lane.b32.xlu0 %v519_v16, 256 }
 0x27f   : > { %529 = vbcast.lane.b32.xlu1 %v519_v16, 272 }
 0x283   : > { %533 = vbcast.lane.b32.xlu1 %v519_v16, 280 }
 0x2ed   : > { %v526_v17 = vpop.permute.xlu1 %525  ;;  %v522_v18 = vpop.permute.xlu0 %521 }
 0x2ee   : > { %v537_v19 = vmul.f32 %v526_v17, %v993_v5  ;;  %v538_v20 = vmul.f32 %v526_v17, %v995_v6  ;;  %v535_v21 = vmul.f32 %v522_v18, %v987_v2  ;;  %v536_v22 = vmul.f32 %v522_v18, %v991_v4 }
 0x2f0   : > { %545 = vst [vmem:[%s188_s27 + $0x10] sm:$0xff] %v537_v19  ;;  %546 = vst [vmem:[%s188_s27 + $0x18] sm:$0xff] %v538_v20 }
 0x2f1   : > { %543 = vst [vmem:[%s188_s27] sm:$0xff] %v535_v21  ;;  %544 = vst [vmem:[%s188_s27 + $0x8] sm:$0xff] %v536_v22  ;;  %v530_v23 = vpop.permute.xlu1 %529 }
 0x2f2   : > { %v539_v24 = vmul.f32 %v530_v23, %v983_v0  ;;  %v540_v5 = vmul.f32 %v530_v23, %v985_v1 }
 0x2f4   : > { %547 = vst [vmem:[%s188_s27 + $0x20] sm:$0xff] %v539_v24  ;;  %548 = vst [vmem:[%s188_s27 + $0x28] sm:$0xff] %v540_v5 }
 0x2f5   : > { %v534_v2 = vpop.permute.xlu1 %533 }
 0x2f6   : > { %v541_v4 = vmul.f32 %v534_v2, %v1003_v10  ;;  %v542_v0 = vmul.f32 %v534_v2, %v1005_v11 }
 0x2f8   : > { %549 = vst [vmem:[%s188_s27 + $0x30] sm:$0xff] %v541_v4  ;;  %550 = vst [vmem:[%s188_s27 + $0x38] sm:$0xff] %v542_v0 }
 0x2f9   : > { %795 = shalt.err (!%p792_p10)
}
 0x2fa   : > { %s796_s7 = scalar_lea.hbm %s1070_s10, 1024  ;;  %s800_s19 = scalar_lea.hbm %s1118_s3, 2048 }
 0x2fb   : > { %p797_p0 = scmp.ne.s32.totalorder %s1070_s10, %s796_s7  ;;  %p801_p1 = scmp.lt.s32.totalorder %s1070_s10, %s1118_s3 }
 0x2fc   : > { %p802_p3 = scmp.lt.s32.totalorder %s800_s19, %s796_s7 }
 0x2fd   : > { %p798_p2 = pnand %p797_p0, %p1127_p12 }
 0x2fe   : > { %p803_p6 = por %p802_p3, %p801_p1 }
 0x2ff   : > { %p799_p9 = pneg %p798_p2 }
 0x301   : > { %p804_p11 = pnand %p803_p6, %p799_p9 }
 0x303   : > { %807 = shalt.err (!%p804_p11)
}
 0x304   : > { %s854_s26 = smov 256   ;;  %s855_s27 = smov 16  }
 0x305   : > { %700 = dma.vmem_to_hbm [thread:$0]  (%p1127_p12), %s1065_s28, 1024, %s1070_s10, %s552_s16, %s854_s26, %s854_s26, %s855_s27  }
 0x306 PF: > { %s580_s29 = sand.u32 1, %s834_s12   ;;  %p1128_p13 = scmp.ne.s32.totalorder %s1124_s25, 0 }
 0x307   : > { %p1129_p4 = scmp.ge.s32.totalorder %s846_s15, 2  ;;  %s581_s30 = scalar_lea.sflag [#allocation4], %s580_s29 }
 0x309   : > { %p707_p5 = pnand %p1129_p4, %p1128_p13 }
 0x30b   : > { %p708_p7 = pneg %p707_p5 }
 0x30d   : > { %829 = dma.done.wait (%p708_p7), %s581_s30, 1024  }
 0x30e   : > { %831 = vsyncadd (%p708_p7), %s581_s30, 4294966272  ;;  %p16_p8 = scmp.ge.s32.totalorder %s901_s18, 4   ;;  %s1130_s12 = smov %s838_s13 }
 0x30f   : > { %s1131_s13 = smov %s842_s14  ;;  %s1132_s14 = smov %s913_s21 }
 0x310   : > { %s1133_s15 = smov %s901_s18  ;;  %18 = sbr.rel (!%p16_p8) target bundleno = 5 (0x5), region = 77 }
 0x315   :  { %586 = vsyncpa [#allocation3], 1 }
 0x316   :  { %588 = vsyncpa [#allocation3 + $0x1], 1 }
 0x317   :  { %589 = vsyncpa [#allocation4], 1 }
 0x318   :  { %591 = vsyncpa [#allocation4 + $0x1], 1 }

</bundles_post_ra>
